<compile_context>
chip_gen: v5e
topology: v5e:2x2
jax: 0.10.0
libtpu: 0.0.40
codegen_flags: <defaults>
</compile_context>

<pallas_src>
import jax
import jax.numpy as jnp
from jax.experimental import pallas as pl
from jax.experimental.pallas import tpu as pltpu

LANE = 128
SUBLANE = 8


def _round_up(x, m):
    return ((x + m - 1) // m) * m


def autoencoder_kernel(x_ref, w1_ref, b1_ref, w2_ref, b2_ref, o_ref):
    # Encoder: h = relu(x @ W1 + b1) -- bf16 operands on the MXU, f32 accumulate.
    h = jnp.dot(x_ref[...], w1_ref[...], preferred_element_type=jnp.float32)
    h = jnp.maximum(h + b1_ref[...], 0.0)
    # Decoder: y = h @ W2 + b2 (padded K; workload is HBM-bound so MXU path is fine).
    y = jnp.dot(h.astype(jnp.bfloat16), w2_ref[...], preferred_element_type=jnp.float32)
    y = y + b2_ref[...]
    # sigmoid(y) = 1 / (1 + exp(-y)); exp + approximate reciprocal both land on the EUP.
    o_ref[...] = pl.reciprocal(1.0 + jnp.exp(-y), approx=True).astype(o_ref.dtype)


def autoencoder_forward(x, w1, b1, w2, b2, *, tile_b=512):
    """x: (B, D_in) f32; w1: (D_in, D_enc); b1: (1, D_enc); w2: (D_enc, D_in); b2: (1, D_in)."""
    B, D_in = x.shape
    D_enc = w1.shape[1]

    # Zero-pad to TPU-friendly shapes (last dim multiple of 128, batch multiple of 8).
    # Zero pad rows/cols keep the math exact; padded output region is sliced off below.
    d_in_p = _round_up(D_in, LANE)
    d_enc_p = _round_up(D_enc, LANE)
    tile_b = min(tile_b, _round_up(B, SUBLANE))
    b_p = _round_up(B, tile_b)

    b1 = jnp.reshape(b1, (1, D_enc)).astype(jnp.float32)
    b2 = jnp.reshape(b2, (1, D_in)).astype(jnp.float32)

    x_p = jnp.pad(x.astype(jnp.bfloat16), ((0, b_p - B), (0, d_in_p - D_in)))
    w1_p = jnp.pad(w1.astype(jnp.bfloat16), ((0, d_in_p - D_in), (0, d_enc_p - D_enc)))
    w2_p = jnp.pad(w2.astype(jnp.bfloat16), ((0, d_enc_p - D_enc), (0, d_in_p - D_in)))
    b1_p = jnp.pad(b1, ((0, 0), (0, d_enc_p - D_enc)))
    b2_p = jnp.pad(b2, ((0, 0), (0, d_in_p - D_in)))

    grid = (b_p // tile_b,)
    cost = pl.CostEstimate(
        flops=2 * b_p * (d_in_p * d_enc_p + d_enc_p * d_in_p),
        transcendentals=b_p * d_in_p,
        bytes_accessed=(x_p.size * 2 + w1_p.size * 2 + w2_p.size * 2
                        + b1_p.size * 4 + b2_p.size * 4 + b_p * d_in_p * 4),
    )

    out_p = pl.pallas_call(
        autoencoder_kernel,
        out_shape=jax.ShapeDtypeStruct((b_p, d_in_p), jnp.float32),
        grid=grid,
        in_specs=[
            pl.BlockSpec((tile_b, d_in_p), lambda i: (i, 0)),    # x: batch-tiled, pipelined
            pl.BlockSpec((d_in_p, d_enc_p), lambda i: (0, 0)),   # W1: VMEM-resident
            pl.BlockSpec((1, d_enc_p), lambda i: (0, 0)),        # b1
            pl.BlockSpec((d_enc_p, d_in_p), lambda i: (0, 0)),   # W2
            pl.BlockSpec((1, d_in_p), lambda i: (0, 0)),         # b2
        ],
        out_specs=pl.BlockSpec((tile_b, d_in_p), lambda i: (i, 0)),
        compiler_params=pltpu.CompilerParams(
            dimension_semantics=("parallel",),
        ),
        cost_estimate=cost,
    )(x_p, w1_p, b1_p, w2_p, b2_p)

    return out_p[:B, :D_in]


def init_params(key, input_dim, encoding_dim):
    """Deterministic init mimicking PyTorch Linear (uniform in +/- 1/sqrt(fan_in))."""
    k1, k2, k3, k4 = jax.random.split(key, 4)
    lim1 = 1.0 / jnp.sqrt(jnp.float32(input_dim))
    lim2 = 1.0 / jnp.sqrt(jnp.float32(encoding_dim))
    # Weights stored already transposed: (in_features, out_features).
    w1 = jax.random.uniform(k1, (input_dim, encoding_dim), jnp.float32, -lim1, lim1)
    b1 = jax.random.uniform(k2, (1, encoding_dim), jnp.float32, -lim1, lim1)
    w2 = jax.random.uniform(k3, (encoding_dim, input_dim), jnp.float32, -lim2, lim2)
    b2 = jax.random.uniform(k4, (1, input_dim), jnp.float32, -lim2, lim2)
    return w1, b1, w2, b2


if __name__ == "__main__":
    # 7 "sentences" (batch), TF-IDF vocab of 16 terms, encoding_dim = 2.
    batch, input_dim, encoding_dim = 7, 16, 2

    key = jax.random.PRNGKey(0)
    kx, kp = jax.random.split(key)
    # Synthetic non-negative TF-IDF-like features (the sklearn/nltk preprocessing is
    # host-side data prep, not part of the nn.Module forward).
    x = jax.random.uniform(kx, (batch, input_dim), jnp.float32, 0.0, 1.0)
    w1, b1, w2, b2 = init_params(kp, input_dim, encoding_dim)

    out = autoencoder_forward(x, w1, b1, w2, b2)
    out = jax.block_until_ready(out)

    # Reference in plain JAX with matching bf16 operand quantization (f32 accumulate).
    xq = x.astype(jnp.bfloat16).astype(jnp.float32)
    w1q = w1.astype(jnp.bfloat16).astype(jnp.float32)
    w2q = w2.astype(jnp.bfloat16).astype(jnp.float32)
    h_ref = jnp.maximum(xq @ w1q + b1, 0.0)
    hq = h_ref.astype(jnp.bfloat16).astype(jnp.float32)
    y_ref = jax.nn.sigmoid(hq @ w2q + b2)

    assert out.shape == (batch, input_dim)
    assert jnp.max(jnp.abs(out - y_ref)) < 5e-3, float(jnp.max(jnp.abs(out - y_ref)))

    print("KERNEL_OK")
</pallas_src>

<mosaic_0001>
module attributes {stable_mosaic.version = 11 : i64} {
  func.func @autoencoder_kernel(%arg0: i32, %arg1: memref<8x128xbf16, #tpu.memory_space<vmem>>, %arg2: memref<128x128xbf16, #tpu.memory_space<vmem>>, %arg3: memref<1x128xf32, #tpu.memory_space<vmem>>, %arg4: memref<128x128xbf16, #tpu.memory_space<vmem>>, %arg5: memref<1x128xf32, #tpu.memory_space<vmem>>, %arg6: memref<8x128xf32, #tpu.memory_space<vmem>>) attributes {dimension_semantics = [#tpu.dimension_semantics<parallel>], iteration_bounds = array<i64: 1>, scalar_prefetch = 0 : i64, scratch_operands = 0 : i64, tpu.core_type = #tpu.core_type<tc>, window_params = [{transform_indices = @transform_0, window_bounds = array<i64: 8, 128>}, {pipeline_mode = #tpu.pipeline_mode<synchronous>, transform_indices = @transform_1, window_bounds = array<i64: 128, 128>}, {pipeline_mode = #tpu.pipeline_mode<synchronous>, transform_indices = @transform_2, window_bounds = array<i64: 1, 128>}, {pipeline_mode = #tpu.pipeline_mode<synchronous>, transform_indices = @transform_3, window_bounds = array<i64: 128, 128>}, {pipeline_mode = #tpu.pipeline_mode<synchronous>, transform_indices = @transform_4, window_bounds = array<i64: 1, 128>}, {transform_indices = @transform_5, window_bounds = array<i64: 8, 128>}]} {
    %c0 = arith.constant 0 : index
    %c0_0 = arith.constant 0 : index
    %0 = vector.load %arg1[%c0, %c0_0] : memref<8x128xbf16, #tpu.memory_space<vmem>>, vector<8x128xbf16>
    %c0_1 = arith.constant 0 : index
    %c0_2 = arith.constant 0 : index
    %1 = vector.load %arg2[%c0_1, %c0_2] : memref<128x128xbf16, #tpu.memory_space<vmem>>, vector<128x128xbf16>
    %cst = arith.constant dense<0.000000e+00> : vector<8x128xf32>
    %2 = tpu.matmul %0, %1, %cst {dimension_numbers = #tpu.dot_dimension_numbers<[1], [0], [0], [1], [0, 0, 1, 1], [], []>} : vector<8x128xbf16>, vector<128x128xbf16>, vector<8x128xf32> -> vector<8x128xf32>
    %c0_3 = arith.constant 0 : index
    %c0_4 = arith.constant 0 : index
    %3 = vector.load %arg3[%c0_3, %c0_4] : memref<1x128xf32, #tpu.memory_space<vmem>>, vector<1x128xf32>
    %4 = vector.broadcast %3 : vector<1x128xf32> to vector<8x128xf32>
    %5 = arith.addf %2, %4 : vector<8x128xf32>
    %cst_5 = arith.constant 0.000000e+00 : f32
    %6 = vector.broadcast %cst_5 : f32 to vector<8x128xf32>
    %7 = arith.maximumf %5, %6 : vector<8x128xf32>
    %8 = arith.truncf %7 : vector<8x128xf32> to vector<8x128xbf16>
    %c0_6 = arith.constant 0 : index
    %c0_7 = arith.constant 0 : index
    %9 = vector.load %arg4[%c0_6, %c0_7] : memref<128x128xbf16, #tpu.memory_space<vmem>>, vector<128x128xbf16>
    %cst_8 = arith.constant dense<0.000000e+00> : vector<8x128xf32>
    %10 = tpu.matmul %8, %9, %cst_8 {dimension_numbers = #tpu.dot_dimension_numbers<[1], [0], [0], [1], [0, 0, 1, 1], [], []>} : vector<8x128xbf16>, vector<128x128xbf16>, vector<8x128xf32> -> vector<8x128xf32>
    %c0_9 = arith.constant 0 : index
    %c0_10 = arith.constant 0 : index
    %11 = vector.load %arg5[%c0_9, %c0_10] : memref<1x128xf32, #tpu.memory_space<vmem>>, vector<1x128xf32>
    %12 = vector.broadcast %11 : vector<1x128xf32> to vector<8x128xf32>
    %13 = arith.addf %10, %12 : vector<8x128xf32>
    %cst_11 = arith.constant 0.000000e+00 : f32
    %14 = vector.broadcast %cst_11 : f32 to vector<8x128xf32>
    %15 = arith.subf %14, %13 : vector<8x128xf32>
    %16 = math.exp %15 : vector<8x128xf32>
    %cst_12 = arith.constant 1.000000e+00 : f32
    %17 = vector.broadcast %cst_12 : f32 to vector<8x128xf32>
    %18 = arith.addf %17, %16 : vector<8x128xf32>
    %19 = tpu.reciprocal %18 {approx = true} : vector<8x128xf32> -> vector<8x128xf32>
    %c0_13 = arith.constant 0 : index
    %c0_14 = arith.constant 0 : index
    %20 = vector.load %arg6[%c0_13, %c0_14] : memref<8x128xf32, #tpu.memory_space<vmem>>, vector<8x128xf32>
    tpu.vector_store %arg6[%c0_13, %c0_14], %19 {strides = array<i32>} : memref<8x128xf32, #tpu.memory_space<vmem>>, vector<8x128xf32>,
    return
  }
  func.func @transform_0(%arg0: i32) -> (i32, i32) {
    %c0_i32 = arith.constant 0 : i32
    %c0_i32_0 = arith.constant 0 : i32
    return %arg0, %c0_i32 : i32, i32
  }
  func.func @transform_1(%arg0: i32) -> (i32, i32) {
    %c0_i32 = arith.constant 0 : i32
    %c0_i32_0 = arith.constant 0 : i32
    %c0_i32_1 = arith.constant 0 : i32
    return %c0_i32, %c0_i32_0 : i32, i32
  }
  func.func @transform_2(%arg0: i32) -> (i32, i32) {
    %c0_i32 = arith.constant 0 : i32
    %c0_i32_0 = arith.constant 0 : i32
    %c0_i32_1 = arith.constant 0 : i32
    return %c0_i32, %c0_i32_0 : i32, i32
  }
  func.func @transform_3(%arg0: i32) -> (i32, i32) {
    %c0_i32 = arith.constant 0 : i32
    %c0_i32_0 = arith.constant 0 : i32
    %c0_i32_1 = arith.constant 0 : i32
    return %c0_i32, %c0_i32_0 : i32, i32
  }
  func.func @transform_4(%arg0: i32) -> (i32, i32) {
    %c0_i32 = arith.constant 0 : i32
    %c0_i32_0 = arith.constant 0 : i32
    %c0_i32_1 = arith.constant 0 : i32
    return %c0_i32, %c0_i32_0 : i32, i32
  }
  func.func @transform_5(%arg0: i32) -> (i32, i32) {
    %c0_i32 = arith.constant 0 : i32
    %c0_i32_0 = arith.constant 0 : i32
    return %arg0, %c0_i32 : i32, i32
  }
}

</mosaic_0001>

<bundles_post_ra>
// kernel: tpu_custom_call.1
= control target key start
LH: loop header
LB: loop body
LE: loop exit
PB: predicated region body
PF: predicated region fallthrough
CT: control target
= control target key end

     0   :  { %10 = vsyncpa [#allocation3], 0  ;;  %s503_s0 = inlined_call_operand.hbm [shape: bf16[8,128], index: 0, kind: input, shape index: {}]   ;;  %s504_s1 = inlined_call_operand.hbm [shape: bf16[128,128], index: 1, kind: input, shape index: {}]   ;;  %s505_s2 = inlined_call_operand.vmem [shape: f32[1,128], index: 2, kind: input, shape index: {}]   ;;  %s506_s3 = inlined_call_operand.hbm [shape: bf16[128,128], index: 3, kind: input, shape index: {}]   ;;  %s507_s4 = inlined_call_operand.vmem [shape: f32[1,128], index: 4, kind: input, shape index: {}]   ;;  %s508_s5 = inlined_call_operand.hbm [shape: f32[8,128], index: 5, kind: output, shape index: {}]  }
   0x1   :  { %11 = vsyncpa [#allocation6], 0  ;;  %s28_s20 = sshll.u32 %s504_s1, 4  ;;  %s29_s20 = int_to_ptr.hbm [resolvable:$true] %s28_s20 }
   0x2   :  { %12 = vsyncpa [#allocation4], 0  ;;  %s449_s21 = smov [#allocation5]   ;;  %s18_s25 = sshll.u32 %s503_s0, 4  ;;  %s19_s25 = int_to_ptr.hbm [resolvable:$true] %s18_s25 }
   0x3   :  { %s30_s22 = sshll.u32 %s449_s21, 4  ;;  %s450_s26 = smov 64   ;;  %s31_s22 = int_to_ptr.vmem [resolvable:$true] %s30_s22 }
   0x4   :  { %s451_s27 = smov 4   ;;  %s452_s28 = smov [#allocation2]  }
   0x5   :  { %36 = dma.hbm_to_vmem [thread:$0]  %s29_s20, 1024, %s31_s22, [#allocation6], %s450_s26, %s450_s26, %s451_s27  }
   0x6   :  { %s20_s29 = sshll.u32 %s452_s28, 4  ;;  %s43_s7 = sshll.u32 %s506_s3, 4  ;;  %s21_s29 = int_to_ptr.vmem [resolvable:$true] %s20_s29  ;;  %s44_s7 = int_to_ptr.hbm [resolvable:$true] %s43_s7 }
   0x7   :  { %23 = dma.hbm_to_vmem [thread:$0]  %s19_s25, 64, %s21_s29, [#allocation3]  }
   0x8   :  { %s453_s1 = smov [#allocation7]  }
   0x9   :  { %s45_s8 = sshll.u32 %s453_s1, 4  ;;  %s46_s8 = int_to_ptr.vmem [resolvable:$true] %s45_s8 }
   0xa   :  { %51 = dma.hbm_to_vmem [thread:$0]  %s44_s7, 1024, %s46_s8, [#allocation6], %s450_s26, %s450_s26, %s451_s27  }
   0xb   :  { %443 = dma.done.wait [#allocation3], 64  }
   0xc   :  { %444 = vsyncadd [#allocation3], 4294967232 }
   0xd   :  { %445 = dma.done.wait [#allocation6], 2048  }
   0xe   :  { %446 = vsyncadd [#allocation6], 4294965248  ;;  %v326_v0 = vld [vmem:[#allocation5 + $0x38] sm:$0xff]  ;;  %v325_v1 = vld [vmem:[#allocation5 + $0x30] sm:$0xff]  ;;  %s244_s14 = sshll.u32 %s508_s5, 4  ;;  %s245_s14 = int_to_ptr.hbm [resolvable:$true] %s244_s14 }
   0xf   :  { %135 = vmatpush.bf16.msra.mxu0 %v326_v0  ;;  %v334_v2 = vld [vmem:[#allocation7 + $0x38] sm:$0xff]  ;;  %v333_v3 = vld [vmem:[#allocation7 + $0x30] sm:$0xff]  ;;  %v324_v4 = vld [vmem:[#allocation5 + $0x28] sm:$0xff] }
  0x10   :  { %218 = vmatpush.bf16.msra.mxu1 %v334_v2  ;;  %v332_v5 = vld [vmem:[#allocation7 + $0x28] sm:$0xff]  ;;  %v323_v6 = vld [vmem:[#allocation5 + $0x20] sm:$0xff]  ;;  %v322_v8 = vld [vmem:[#allocation5 + $0x18] sm:$0xff] }
  0x11   :  { %v331_v7 = vld [vmem:[#allocation7 + $0x20] sm:$0xff]  ;;  %v330_v9 = vld [vmem:[#allocation7 + $0x18] sm:$0xff]  ;;  %v321_v10 = vld [vmem:[#allocation5 + $0x10] sm:$0xff] }
  0x12   :  { %v329_v11 = vld [vmem:[#allocation7 + $0x10] sm:$0xff]  ;;  %v320_v12 = vld [vmem:[#allocation5 + $0x8] sm:$0xff]  ;;  %v319_v13 = vld [vmem:[#allocation5] sm:$0xff] }
  0x13   :  { %136 = vmatpush.bf16.msra.mxu0 %v325_v1  ;;  %v66_v14 = vld [vmem:[#allocation2] sm:$0xf]  ;;  %v328_v15 = vld [vmem:[#allocation7 + $0x8] sm:$0xff]  ;;  %v327_v16 = vld [vmem:[#allocation7] sm:$0xff] }
  0x14   :  { %219 = vmatpush.bf16.msra.mxu1 %v333_v3  ;;  %v341_v17 = vld [vmem:[%s505_s2] ss:$0 sm:$0xff]  ;;  %s454_s2 = smov [#allocation8]  }
  0x15   :  { %v342_v23 = vld [vmem:[%s507_s4] ss:$0 sm:$0xff]  ;;  %s242_s11 = sshll.u32 %s454_s2, 4  ;;  %s243_s11 = int_to_ptr.vmem [resolvable:$true] %s242_s11 }
  0x17   :  { %137 = vmatpush.bf16.msra.mxu0 %v324_v4 }
  0x18   :  { %220 = vmatpush.bf16.msra.mxu1 %v332_v5 }
  0x1b   :  { %138 = vmatpush.bf16.msra.mxu0 %v323_v6 }
  0x1c   :  { %221 = vmatpush.bf16.msra.mxu1 %v331_v7 }
  0x1f   :  { %139 = vmatpush.bf16.msra.mxu0 %v322_v8 }
  0x20   :  { %222 = vmatpush.bf16.msra.mxu1 %v330_v9 }
  0x23   :  { %140 = vmatpush.bf16.msra.mxu0 %v321_v10 }
  0x24   :  { %223 = vmatpush.bf16.msra.mxu1 %v329_v11 }
  0x27   :  { %141 = vmatpush.bf16.msra.mxu0 %v320_v12 }
  0x28   :  { %224 = vmatpush.bf16.msra.mxu1 %v328_v15 }
  0x2b   :  { %142 = vmatpush.bf16.msra.mxu0 %v319_v13 }
  0x2c   :  { %225 = vmatpush.bf16.msra.mxu1 %v327_v16 }
  0x2e   :  { %143 = vmatmul.bf16.vlgmr.msra.gmra.mxu0 %v66_v14 }
  0xab   :  { %v144_v18 = vpop.f32.mrf.mxu0 }
  0xac   :  { %v145_v19 = vadd.f32 %v341_v17, %v144_v18 }
  0xae   :  { %v148_v20 = vmax.f32 %v145_v19, 0.0 }
  0xb0   :  { %v149_v21 = vpack.c.bf16 %v148_v20, %v148_v20 }
  0xb2   :  { %226 = vmatmul.bf16.vlgmr.msra.gmra.mxu1 %v149_v21 }
  0xb3   :  { %v146_v22 = vpop.f32.mrf.mxu0 }
 0x12f   :  { %v227_v24 = vpop.f32.mrf.mxu1 }
 0x130   :  { %v228_v25 = vadd.f32 %v342_v23, %v227_v24 }
 0x132   :  { %v231_v26 = vsub.f32 0.0, %v228_v25 }
 0x134   :  { %v232_v27 = vmul.f32 1.442695, %v231_v26 }
 0x136   :  { %343 = vpow2.f32 %v232_v27 }
 0x137   :  { %v229_v28 = vpop.f32.mrf.mxu1 }
 0x13c   :  { %v344_v29 = vpop.eup %343 }
 0x13d   :  { %v234_v30 = vadd.f32 1.0, %v344_v29 }
 0x13f   :  { %345 = vrcp.f32 %v234_v30 }
 0x145   :  { %v346_v31 = vpop.eup %345 }
 0x146   :  { %236 = vst [vmem:[#allocation8] sm:$0xff] %v346_v31 }
 0x147   :  { %247 = dma.vmem_to_hbm [thread:$0]  %s243_s11, 128, %s245_s14, [#allocation4]  }
 0x148   :  { %447 = dma.done.wait [#allocation4], 128  }
 0x149   :  { %448 = vsyncadd [#allocation4], 4294967168 }
 0x14a   :  { %252 = vsyncpa [#allocation3], 1 }
 0x14b   :  { %253 = vsyncpa [#allocation6], 1 }
 0x14c   :  { %254 = vsyncpa [#allocation4], 1 }

</bundles_post_ra>
